<compile_context>
chip_gen: v5e
topology: v5e:2x2
jax: 0.10.0
libtpu: 0.0.40
codegen_flags: <defaults>
</compile_context>

<pallas_src>
import functools

import jax
import jax.numpy as jnp
from jax.experimental import pallas as pl
from jax.experimental.pallas import tpu as pltpu

_LANES = 128
_MAX_TILE_M = 1024      # 1024x128 f32 block = 512 KiB; fits all chips' scoped VMEM
_NUM_CORE_SPLITS = 2    # leading "parallel" axis -> both TCs on v7x


def _vmse_kernel(x_ref, t_ref, v_ref, sse_ref, msk_ref, acc_sse, acc_msk, *,
                 thr, is_lt, n_elements, tile_m, tiles_per_core):
    c = pl.program_id(0)          # core split index
    i = pl.program_id(1)          # row-tile index within this core's shard

    @pl.when(i == 0)
    def _():
        acc_sse[...] = jnp.zeros_like(acc_sse)
        acc_msk[...] = jnp.zeros_like(acc_msk)

    x = x_ref[...].astype(jnp.float32)
    t = t_ref[...].astype(jnp.float32)
    v = v_ref[...].astype(jnp.float32)

    # Global element index of every position in this *logical* tile. Tail-pad
    # elements, partial edge rows and duplicated (clamped) tiles all land at
    # elem_idx >= n_elements and are excluded by selection below.
    t_global = c * tiles_per_core + i
    row = jax.lax.broadcasted_iota(jnp.int32, (tile_m, _LANES), 0)
    lane = jax.lax.broadcasted_iota(jnp.int32, (tile_m, _LANES), 1)
    elem_idx = (t_global * tile_m + row) * _LANES + lane
    in_bounds = elem_idx < n_elements

    thr_ok = (t >= thr) if is_lt else (t <= thr)
    valid = jnp.logical_and(thr_ok, in_bounds)

    d = x - t
    sq = d * d * v                                  # (input - target)^2 * vmask
    contrib = jnp.where(valid, sq, 0.0)             # masked squared error
    mask_w = jnp.where(valid, v, 0.0)               # mask = (thr cond) * vmask

    # Fold (tile_m, 128) -> (8, 128): pure VPU vreg adds each step; the
    # expensive cross-lane/sublane reduction is deferred to the last step.
    acc_sse[...] += jnp.sum(contrib.reshape(tile_m // 8, 8, _LANES), axis=0)
    acc_msk[...] += jnp.sum(mask_w.reshape(tile_m // 8, 8, _LANES), axis=0)

    @pl.when(i == pl.num_programs(1) - 1)
    def _():
        s = jnp.sum(acc_sse[...], axis=0, keepdims=True)   # (1, 128)
        s = jnp.sum(s, axis=1, keepdims=True)               # (1, 1)
        m = jnp.sum(acc_msk[...], axis=0, keepdims=True)
        m = jnp.sum(m, axis=1, keepdims=True)
        sse_ref[...] = jnp.broadcast_to(s, (1, _LANES))
        msk_ref[...] = jnp.broadcast_to(m, (1, _LANES))


def vmse_loss(x, target, vmask, thr=0.5, mode='lt', *, use_pallas=None):
    """Pallas equivalent of vMSEloss(thr, mode)(x, target, vmask) -> scalar f32."""
    assert 0.0 <= float(thr) <= 1.0, "thr should be in [0, 1]."
    assert mode in ('lt', 'st'), "mode should be either 'lt' or 'st'."
    assert x.shape == target.shape == vmask.shape

    n = x.size
    if use_pallas is None:
        # Below ~1M elements, launch + pipeline prologue dwarfs the work.
        use_pallas = n >= (1 << 20)
    if not use_pallas:
        m = (target >= thr) if mode == 'lt' else (target <= thr)
        m = m.astype(jnp.float32) * vmask.astype(jnp.float32)
        d = x.astype(jnp.float32) - target.astype(jnp.float32)
        return jnp.sum(d * d * m) / jnp.sum(m)

    xf = jnp.ravel(x)
    tf = jnp.ravel(target)
    vf = jnp.ravel(vmask)

    # Pad only up to the next multiple of 8*128 elements (<=1023 elems); when
    # n is already a multiple of 1024 the reshape below is a no-copy bitcast.
    granule = 8 * _LANES
    n_pad = pl.cdiv(n, granule) * granule
    if n_pad != n:
        pad = n_pad - n
        xf = jnp.pad(xf, (0, pad))
        tf = jnp.pad(tf, (0, pad))
        vf = jnp.pad(vf, (0, pad))
    rows = n_pad // _LANES                     # multiple of 8

    tile_m = min(_MAX_TILE_M, rows)            # multiple of 8 by construction
    total_tiles = pl.cdiv(rows, tile_m)
    tiles_per_core = pl.cdiv(total_tiles, _NUM_CORE_SPLITS)

    x2d = xf.reshape(rows, _LANES)
    t2d = tf.reshape(rows, _LANES)
    v2d = vf.reshape(rows, _LANES)

    def in_map(c, i):
        # Clamp duplicated tail tiles into range; the kernel masks them out
        # via the (unclamped) global element index.
        return (jnp.minimum(c * tiles_per_core + i, total_tiles - 1), 0)

    kernel = functools.partial(
        _vmse_kernel, thr=float(thr), is_lt=(mode == 'lt'),
        n_elements=n, tile_m=tile_m, tiles_per_core=tiles_per_core)

    sse, msk = pl.pallas_call(
        kernel,
        out_shape=(
            jax.ShapeDtypeStruct((1, _NUM_CORE_SPLITS * _LANES), jnp.float32),
            jax.ShapeDtypeStruct((1, _NUM_CORE_SPLITS * _LANES), jnp.float32),
        ),
        grid_spec=pltpu.PrefetchScalarGridSpec(
            num_scalar_prefetch=0,
            grid=(_NUM_CORE_SPLITS, tiles_per_core),
            in_specs=[
                pl.BlockSpec((tile_m, _LANES), in_map),
                pl.BlockSpec((tile_m, _LANES), in_map),
                pl.BlockSpec((tile_m, _LANES), in_map),
            ],
            out_specs=[
                pl.BlockSpec((1, _LANES), lambda c, i: (0, c)),
                pl.BlockSpec((1, _LANES), lambda c, i: (0, c)),
            ],
            scratch_shapes=[
                pltpu.VMEM((8, _LANES), jnp.float32),
                pltpu.VMEM((8, _LANES), jnp.float32),
            ],
        ),
        compiler_params=pltpu.CompilerParams(
            dimension_semantics=("parallel", "arbitrary")),
    )(x2d, t2d, v2d)

    sse_total = jnp.sum(sse.reshape(_NUM_CORE_SPLITS, _LANES)[:, 0])
    msk_total = jnp.sum(msk.reshape(_NUM_CORE_SPLITS, _LANES)[:, 0])
    return sse_total / msk_total


class VMSELoss:
    """Mirror of the PyTorch vMSEloss module."""

    def __init__(self, thr, mode='lt'):
        assert 0.0 <= float(thr) <= 1.0, "thr should be in [0, 1]."
        assert mode in ('lt', 'st'), "mode should be either 'lt' or 'st'."
        self.thr = thr
        self.mode = mode

    def __call__(self, input, target=None, vmask=None, **kw):
        return vmse_loss(input, target, vmask, self.thr, self.mode, **kw)


if __name__ == "__main__":
    key = jax.random.PRNGKey(0)
    k1, k2, k3 = jax.random.split(key, 3)

    # NCHW-shaped example inputs.
    shape = (2, 4, 16, 16)
    x = jax.random.normal(k1, shape, dtype=jnp.float32)
    target = jax.random.uniform(k2, shape, dtype=jnp.float32)            # in [0, 1)
    vmask = (jax.random.uniform(k3, shape) > 0.3).astype(jnp.float32)    # validity mask

    thr = 0.5
    for mode in ("lt", "st"):
        loss_fn = VMSELoss(thr, mode)
        # Force the Pallas path even for this small demo input.
        loss = loss_fn(x, target, vmask, use_pallas=True)
        loss = jax.block_until_ready(loss)

        # Pure-JAX reference (mirrors the torch forward exactly).
        m = (target >= thr) if mode == "lt" else (target <= thr)
        m = m.astype(jnp.float32) * vmask
        ref = jnp.sum((x - target) ** 2 * m) / jnp.sum(m)
        assert jnp.allclose(loss, ref, rtol=1e-5, atol=1e-6), (mode, loss, ref)

    print("KERNEL_OK")
</pallas_src>

<mosaic_0001>
module attributes {stable_mosaic.version = 11 : i64} {
  func.func @_vmse_kernel(%arg0: i32, %arg1: i32, %arg2: memref<16x128xf32, #tpu.memory_space<vmem>>, %arg3: memref<16x128xf32, #tpu.memory_space<vmem>>, %arg4: memref<16x128xf32, #tpu.memory_space<vmem>>, %arg5: memref<1x128xf32, #tpu.memory_space<vmem>>, %arg6: memref<1x128xf32, #tpu.memory_space<vmem>>, %arg7: memref<8x128xf32, #tpu.memory_space<vmem>>, %arg8: memref<8x128xf32, #tpu.memory_space<vmem>>) attributes {dimension_semantics = [#tpu.dimension_semantics<parallel>, #tpu.dimension_semantics<arbitrary>], iteration_bounds = array<i64: 2, 1>, scalar_prefetch = 0 : i64, scratch_operands = 2 : i64, tpu.core_type = #tpu.core_type<tc>, window_params = [{transform_indices = @transform_0, window_bounds = array<i64: 16, 128>}, {transform_indices = @transform_1, window_bounds = array<i64: 16, 128>}, {transform_indices = @transform_2, window_bounds = array<i64: 16, 128>}, {transform_indices = @transform_3, window_bounds = array<i64: 1, 128>}, {transform_indices = @transform_4, window_bounds = array<i64: 1, 128>}]} {
    %c0_i32 = arith.constant 0 : i32
    %0 = arith.cmpi eq, %arg1, %c0_i32 : i32
    %1 = arith.extui %0 : i1 to i32
    %c0_i32_0 = arith.constant 0 : i32
    %2 = arith.cmpi ne, %1, %c0_i32_0 : i32
    scf.if %2 {
      %cst_20 = arith.constant 0.000000e+00 : f32
      %41 = vector.broadcast %cst_20 : f32 to vector<8x128xf32>
      %c0_21 = arith.constant 0 : index
      %c0_22 = arith.constant 0 : index
      %42 = vector.load %arg7[%c0_21, %c0_22] : memref<8x128xf32, #tpu.memory_space<vmem>>, vector<8x128xf32>
      tpu.vector_store %arg7[%c0_21, %c0_22], %41 {strides = array<i32>} : memref<8x128xf32, #tpu.memory_space<vmem>>, vector<8x128xf32>,
      %cst_23 = arith.constant 0.000000e+00 : f32
      %43 = vector.broadcast %cst_23 : f32 to vector<8x128xf32>
      %c0_24 = arith.constant 0 : index
      %c0_25 = arith.constant 0 : index
      %44 = vector.load %arg8[%c0_24, %c0_25] : memref<8x128xf32, #tpu.memory_space<vmem>>, vector<8x128xf32>
      tpu.vector_store %arg8[%c0_24, %c0_25], %43 {strides = array<i32>} : memref<8x128xf32, #tpu.memory_space<vmem>>, vector<8x128xf32>,
    } else {
    }
    %c0 = arith.constant 0 : index
    %c0_1 = arith.constant 0 : index
    %3 = vector.load %arg2[%c0, %c0_1] : memref<16x128xf32, #tpu.memory_space<vmem>>, vector<16x128xf32>
    %c0_2 = arith.constant 0 : index
    %c0_3 = arith.constant 0 : index
    %4 = vector.load %arg3[%c0_2, %c0_3] : memref<16x128xf32, #tpu.memory_space<vmem>>, vector<16x128xf32>
    %c0_4 = arith.constant 0 : index
    %c0_5 = arith.constant 0 : index
    %5 = vector.load %arg4[%c0_4, %c0_5] : memref<16x128xf32, #tpu.memory_space<vmem>>, vector<16x128xf32>
    %c1_i32 = arith.constant 1 : i32
    %6 = arith.muli %arg0, %c1_i32 : i32
    %7 = arith.addi %6, %arg1 : i32
    %8 = tpu.iota {dimensions = array<i32: 0>} : vector<16x128xi32>
    %9 = tpu.iota {dimensions = array<i32: 1>} : vector<16x128xi32>
    %c16_i32 = arith.constant 16 : i32
    %10 = arith.muli %7, %c16_i32 : i32
    %11 = vector.broadcast %10 : i32 to vector<16x128xi32>
    %12 = arith.addi %11, %8 : vector<16x128xi32>
    %c128_i32 = arith.constant 128 : i32
    %13 = vector.broadcast %c128_i32 : i32 to vector<16x128xi32>
    %14 = arith.muli %12, %13 : vector<16x128xi32>
    %15 = arith.addi %14, %9 : vector<16x128xi32>
    %c2048_i32 = arith.constant 2048 : i32
    %16 = vector.broadcast %c2048_i32 : i32 to vector<16x128xi32>
    %17 = arith.cmpi slt, %15, %16 : vector<16x128xi32>
    %cst = arith.constant 5.000000e-01 : f32
    %18 = vector.broadcast %cst : f32 to vector<16x128xf32>
    %19 = arith.cmpf oge, %4, %18 : vector<16x128xf32>
    %20 = arith.andi %19, %17 : vector<16x128xi1>
    %21 = arith.subf %3, %4 : vector<16x128xf32>
    %22 = arith.mulf %21, %21 : vector<16x128xf32>
    %23 = arith.mulf %22, %5 : vector<16x128xf32>
    %cst_6 = arith.constant 0.000000e+00 : f32
    %24 = vector.broadcast %cst_6 : f32 to vector<16x128xf32>
    %25 = arith.select %20, %23, %24 : vector<16x128xi1>, vector<16x128xf32>
    %cst_7 = arith.constant 0.000000e+00 : f32
    %26 = vector.broadcast %cst_7 : f32 to vector<16x128xf32>
    %27 = arith.select %20, %5, %26 : vector<16x128xi1>, vector<16x128xf32>
    %c0_8 = arith.constant 0 : index
    %c0_9 = arith.constant 0 : index
    %28 = vector.load %arg7[%c0_8, %c0_9] : memref<8x128xf32, #tpu.memory_space<vmem>>, vector<8x128xf32>
    %29 = vector.shape_cast %25 : vector<16x128xf32> to vector<2x8x128xf32>
    %cst_10 = arith.constant dense<0.000000e+00> : vector<8x128xf32>
    %30 = vector.multi_reduction <add>, %29, %cst_10 [0] : vector<2x8x128xf32> to vector<8x128xf32>
    %31 = arith.addf %28, %30 : vector<8x128xf32>
    %c0_11 = arith.constant 0 : index
    %c0_12 = arith.constant 0 : index
    %32 = vector.load %arg7[%c0_11, %c0_12] : memref<8x128xf32, #tpu.memory_space<vmem>>, vector<8x128xf32>
    tpu.vector_store %arg7[%c0_11, %c0_12], %31 {strides = array<i32>} : memref<8x128xf32, #tpu.memory_space<vmem>>, vector<8x128xf32>,
    %c0_13 = arith.constant 0 : index
    %c0_14 = arith.constant 0 : index
    %33 = vector.load %arg8[%c0_13, %c0_14] : memref<8x128xf32, #tpu.memory_space<vmem>>, vector<8x128xf32>
    %34 = vector.shape_cast %27 : vector<16x128xf32> to vector<2x8x128xf32>
    %cst_15 = arith.constant dense<0.000000e+00> : vector<8x128xf32>
    %35 = vector.multi_reduction <add>, %34, %cst_15 [0] : vector<2x8x128xf32> to vector<8x128xf32>
    %36 = arith.addf %33, %35 : vector<8x128xf32>
    %c0_16 = arith.constant 0 : index
    %c0_17 = arith.constant 0 : index
    %37 = vector.load %arg8[%c0_16, %c0_17] : memref<8x128xf32, #tpu.memory_space<vmem>>, vector<8x128xf32>
    tpu.vector_store %arg8[%c0_16, %c0_17], %36 {strides = array<i32>} : memref<8x128xf32, #tpu.memory_space<vmem>>, vector<8x128xf32>,
    %c0_i32_18 = arith.constant 0 : i32
    %38 = arith.cmpi eq, %arg1, %c0_i32_18 : i32
    %39 = arith.extui %38 : i1 to i32
    %c0_i32_19 = arith.constant 0 : i32
    %40 = arith.cmpi ne, %39, %c0_i32_19 : i32
    scf.if %40 {
      %c0_20 = arith.constant 0 : index
      %c0_21 = arith.constant 0 : index
      %41 = vector.load %arg7[%c0_20, %c0_21] : memref<8x128xf32, #tpu.memory_space<vmem>>, vector<8x128xf32>
      %cst_22 = arith.constant dense<0.000000e+00> : vector<128xf32>
      %42 = vector.multi_reduction <add>, %41, %cst_22 [0] : vector<8x128xf32> to vector<128xf32>
      %43 = vector.shape_cast %42 : vector<128xf32> to vector<1x128xf32>
      %cst_23 = arith.constant dense<0.000000e+00> : vector<1xf32>
      %44 = vector.multi_reduction <add>, %43, %cst_23 [1] : vector<1x128xf32> to vector<1xf32>
      %45 = vector.shape_cast %44 : vector<1xf32> to vector<1x1xf32>
      %c0_24 = arith.constant 0 : index
      %c0_25 = arith.constant 0 : index
      %46 = vector.load %arg8[%c0_24, %c0_25] : memref<8x128xf32, #tpu.memory_space<vmem>>, vector<8x128xf32>
      %cst_26 = arith.constant dense<0.000000e+00> : vector<128xf32>
      %47 = vector.multi_reduction <add>, %46, %cst_26 [0] : vector<8x128xf32> to vector<128xf32>
      %48 = vector.shape_cast %47 : vector<128xf32> to vector<1x128xf32>
      %cst_27 = arith.constant dense<0.000000e+00> : vector<1xf32>
      %49 = vector.multi_reduction <add>, %48, %cst_27 [1] : vector<1x128xf32> to vector<1xf32>
      %50 = vector.shape_cast %49 : vector<1xf32> to vector<1x1xf32>
      %51 = vector.shape_cast %45 : vector<1x1xf32> to vector<1x1xf32>
      %52 = vector.broadcast %51 : vector<1x1xf32> to vector<1x128xf32>
      %c0_28 = arith.constant 0 : index
      %c0_29 = arith.constant 0 : index
      %53 = vector.load %arg5[%c0_28, %c0_29] : memref<1x128xf32, #tpu.memory_space<vmem>>, vector<1x128xf32>
      tpu.vector_store %arg5[%c0_28, %c0_29], %52 {strides = array<i32>} : memref<1x128xf32, #tpu.memory_space<vmem>>, vector<1x128xf32>,
      %54 = vector.shape_cast %50 : vector<1x1xf32> to vector<1x1xf32>
      %55 = vector.broadcast %54 : vector<1x1xf32> to vector<1x128xf32>
      %c0_30 = arith.constant 0 : index
      %c0_31 = arith.constant 0 : index
      %56 = vector.load %arg6[%c0_30, %c0_31] : memref<1x128xf32, #tpu.memory_space<vmem>>, vector<1x128xf32>
      tpu.vector_store %arg6[%c0_30, %c0_31], %55 {strides = array<i32>} : memref<1x128xf32, #tpu.memory_space<vmem>>, vector<1x128xf32>,
    } else {
    }
    return
  }
  func.func @transform_0(%arg0: i32, %arg1: i32) -> (i32, i32) {
    %c1_i32 = arith.constant 1 : i32
    %0 = arith.muli %arg0, %c1_i32 : i32
    %1 = arith.addi %0, %arg1 : i32
    %c0_i32 = arith.constant 0 : i32
    %2 = arith.minsi %1, %c0_i32 : i32
    %c0_i32_0 = arith.constant 0 : i32
    %c0_i32_1 = arith.constant 0 : i32
    return %2, %c0_i32_0 : i32, i32
  }
  func.func @transform_1(%arg0: i32, %arg1: i32) -> (i32, i32) {
    %c1_i32 = arith.constant 1 : i32
    %0 = arith.muli %arg0, %c1_i32 : i32
    %1 = arith.addi %0, %arg1 : i32
    %c0_i32 = arith.constant 0 : i32
    %2 = arith.minsi %1, %c0_i32 : i32
    %c0_i32_0 = arith.constant 0 : i32
    %c0_i32_1 = arith.constant 0 : i32
    return %2, %c0_i32_0 : i32, i32
  }
  func.func @transform_2(%arg0: i32, %arg1: i32) -> (i32, i32) {
    %c1_i32 = arith.constant 1 : i32
    %0 = arith.muli %arg0, %c1_i32 : i32
    %1 = arith.addi %0, %arg1 : i32
    %c0_i32 = arith.constant 0 : i32
    %2 = arith.minsi %1, %c0_i32 : i32
    %c0_i32_0 = arith.constant 0 : i32
    %c0_i32_1 = arith.constant 0 : i32
    return %2, %c0_i32_0 : i32, i32
  }
  func.func @transform_3(%arg0: i32, %arg1: i32) -> (i32, i32) {
    %c0_i32 = arith.constant 0 : i32
    %c0_i32_0 = arith.constant 0 : i32
    return %c0_i32, %arg0 : i32, i32
  }
  func.func @transform_4(%arg0: i32, %arg1: i32) -> (i32, i32) {
    %c0_i32 = arith.constant 0 : i32
    %c0_i32_0 = arith.constant 0 : i32
    return %c0_i32, %arg0 : i32, i32
  }
}

</mosaic_0001>

<bundles_post_ra>
// kernel: tpu_custom_call.1
= control target key start
LH: loop header
LB: loop body
LE: loop exit
PB: predicated region body
PF: predicated region fallthrough
CT: control target
= control target key end

     0   :  { %s1216_s0 = inlined_call_operand.hbm [shape: f32[16,128], index: 0, kind: input, shape index: {}]   ;;  %s1217_s1 = inlined_call_operand.hbm [shape: f32[16,128], index: 1, kind: input, shape index: {}]   ;;  %s1218_s2 = inlined_call_operand.hbm [shape: f32[16,128], index: 2, kind: input, shape index: {}]   ;;  %s1219_s3 = inlined_call_operand.hbm [shape: f32[1,256], index: 3, kind: output, shape index: {0}]   ;;  %s1220_s4 = inlined_call_operand.hbm [shape: f32[1,256], index: 4, kind: output, shape index: {1}]  }
   0x1   :  { %1225 = sst [smem:[#allocation19_spill]] %s1217_s1 }
   0x2   :  { %10 = vsyncpa [#allocation5], 0 }
   0x3   :  { %12 = vsyncpa [#allocation5 + $0x1], 0 }
   0x4   :  { %13 = vsyncpa [#allocation8], 0 }
   0x5   :  { %15 = vsyncpa [#allocation8 + $0x1], 0 }
   0x6   :  { %16 = vsyncpa [#allocation6], 0 }
   0x7   :  { %18 = vsyncpa [#allocation6 + $0x1], 0 }
   0x8   :  { %19 = vsyncpa [#allocation12], 0 }
   0x9   :  { %21 = vsyncpa [#allocation12 + $0x1], 0  ;;  %s994_s15 = smov 0   ;;  %s996_s16 = smov 0  }
   0xa   :  { %s998_s17 = smov 0   ;;  %s1000_s18 = smov 0  }
   0xb   :  { %s1002_s19 = smov 0   ;;  %s1004_s20 = smov 0  }
   0xc   :  { %s1006_s21 = smov 0   ;;  %s1008_s22 = smov 0  }
   0xd LB: > { %1226 = sst [smem:[#allocation17_spill]] %s958_s21  ;;  %s1033_s23 = sadd.s32 4294967295, %s962_s22   ;;  %s962_s22 = sphi %s1008_s22, %s27_s22   ;;  %s958_s21 = sphi %s1006_s21, %s1237_s21   ;;  %s954_s20 = sphi %s1004_s20, %s1236_s20   ;;  %s950_s19 = sphi %s1002_s19, %s1206_s19   ;;  %s946_s18 = sphi %s1000_s18, %s1241_s18   ;;  %s942_s17 = sphi %s998_s17, %s1240_s17   ;;  %s938_s16 = sphi %s996_s16, %s1239_s16   ;;  %s934_s15 = sphi %s994_s15, %s1238_s15  }
   0xe   : > { %s608_s24 = sadd.s32 4294967294, %s962_s22   ;;  %s39_s25 = sadd.s32 1, %s958_s21 }
   0xf   : > { %p41_p0 = scmp.ge.s32.totalorder %s39_s25, 2  ;;  %p931_p1 = scmp.ne.s32.totalorder %s950_s19, 0 }
  0x10   : > { %p60_p2 = scmp.eq.s32.totalorder %s962_s22, 0  ;;  %p65_p3 = scmp.ne.s32.totalorder %s950_s19, %s946_s18 }
  0x11   : > { %s1243_s25 = smov (%p41_p0, %s39_s25), 0  ;;  %p66_p5 = scmp.eq.s32.totalorder %s1033_s23, 0 }
  0x12   : > { %1227 = sst [smem:[#allocation18_spill]] %s1243_s25  ;;  %p1042_p4 = por %p931_p1, %p60_p2 }
  0x13   : > { %p1047_p6 = por %p66_p5, %p65_p3  ;;  %s139_s28 = ssub.s32 %s958_s21, %s1243_s25 }
  0x14   : > { %p140_p7 = scmp.eq.s32.totalorder %s139_s28, 0  ;;  %s142_s29 = sadd.s32 1, %s942_s17 }
  0x15   : > { %p152_p8 = scmp.ne.s32.totalorder %s942_s17, %s938_s16  ;;  %p153_p9 = scmp.eq.s32.totalorder %s1033_s23, 1 }
  0x16   : > { %s1055_s30 = scalar_select %p140_p7, %s942_s17, %s142_s29  }
  0x17   : > { %p158_p10 = scmp.ne.s32.totalorder %s938_s16, %s934_s15  ;;  %p159_p11 = scmp.eq.s32.totalorder %s608_s24, 1 }
  0x18   : > { %p1062_p12 = por %p153_p9, %p152_p8  ;;  %p610_p13 = scmp.ge.s32.totalorder %s962_s22, 2 }
  0x19   : > { %p1067_p0 = por %p159_p11, %p158_p10  ;;  %p657_p1 = scmp.lt.s32.totalorder %s962_s22, 2 }
  0x1a   : > { %s230_s8 = sand.u32 1, %s962_s22   ;;  %s964_s9 = smov [#allocation7]  }
  0x1b   : > { %p1074_p2 = pnand %p657_p1, %p1042_p4  ;;  %s245_s10 = sshll.u32 %s964_s9, 4  ;;  %s246_s10 = int_to_ptr.vmem [resolvable:$true] %s245_s10 }
  0x1c   : > { %s1233_s1 = sld [smem:[#allocation19_spill]]  ;;  %p620_p3 = scmp.ge.s32.totalorder %s962_s22, 1 }
  0x1d   : > { %s1083_s14 = scalar_lea.sflag [#allocation8], %s230_s8  ;;  %p737_p5 = pneg %p1074_p2 }
  0x22   : > { %s243_s13 = sshll.u32 %s1233_s1, 4  ;;  %s740_s29 = scalar_lea.hbm %s1233_s1, 16  ;;  %s244_s13 = int_to_ptr.hbm [resolvable:$true] %s243_s13 }
  0x23   : > { %s733_s18 = sshra.s32 %s244_s13, 4  ;;  %s734_s18 = int_to_ptr.hbm [resolvable:$true] %s733_s18 }
  0x24   : > { %s735_s24 = scalar_lea.hbm %s734_s18, 16 }
  0x25   : > { %p736_p4 = scmp.ne.s32.totalorder %s734_s18, %s735_s24  ;;  %p742_p9 = scmp.lt.s32.totalorder %s740_s29, %s735_s24 }
  0x27   : > { %p738_p7 = pnand %p737_p5, %p736_p4 }
  0x29   : > { %p739_p8 = pneg %p738_p7 }
  0x2b   : > { %p744_p10 = pnand %p742_p9, %p739_p8 }
  0x2d   : > { %747 = shalt.err (!%p744_p10)
}
  0x2e   : > { %s1221_s9 = smov 128   ;;  %s966_s8 = smov 8  }
  0x2f   : > { %646 = dma.hbm_to_vmem [thread:$0]  (!%p1074_p2), %s244_s13, 256, %s246_s10, %s1083_s14, %s1221_s9, %s1221_s9, %s966_s8  }
  0x30   : > { %p278_p11 = scmp.lt.s32.totalorder %s962_s22, 3  ;;  %s967_s12 = smov [#allocation4]  }
  0x31   : > { %s220_s18 = sshll.u32 %s967_s12, 4  ;;  %s218_s28 = sshll.u32 %s1216_s0, 4  ;;  %s221_s18 = int_to_ptr.vmem [resolvable:$true] %s220_s18  ;;  %s219_s28 = int_to_ptr.hbm [resolvable:$true] %s218_s28 }
  0x32   : > { %p1102_p1 = pnand %p620_p3, %p278_p11  ;;  %s763_s29 = sshra.s32 %s219_s28, 4  ;;  %s764_s29 = int_to_ptr.hbm [resolvable:$true] %s763_s29 }
  0x33   : > { %s765_s1 = scalar_lea.hbm %s764_s29, 16  ;;  %s770_s9 = scalar_lea.hbm %s1216_s0, 16 }
  0x34   : > { %p766_p4 = scmp.ne.s32.totalorder %s764_s29, %s765_s1  ;;  %p772_p3 = scmp.lt.s32.totalorder %s770_s9, %s765_s1 }
  0x36   : > { %p768_p7 = pnand %p766_p4, %p737_p5 }
  0x38   : > { %p769_p8 = pneg %p768_p7 }
  0x3a   : > { %p774_p9 = pnand %p772_p3, %p769_p8 }
  0x3c   : > { %777 = shalt.err (!%p774_p9)
}
  0x3d   : > { %s1235_s12 = smov 128   ;;  %s968_s24 = smov [#allocation9]  }
  0x3e   : > { %643 = dma.hbm_to_vmem [thread:$0]  (!%p1074_p2), %s219_s28, 256, %s221_s18, [#allocation5], %s1235_s12, %s1235_s12, %s966_s8  }
  0x3f   : > { %s270_s26 = sshll.u32 %s968_s24, 4  ;;  %s268_s21 = sshll.u32 %s1218_s2, 4  ;;  %s271_s26 = int_to_ptr.vmem [resolvable:$true] %s270_s26  ;;  %s269_s21 = int_to_ptr.hbm [resolvable:$true] %s268_s21 }
  0x40   : > { %s793_s10 = sshra.s32 %s269_s21, 4  ;;  %s800_s18 = scalar_lea.hbm %s1218_s2, 16  ;;  %s794_s10 = int_to_ptr.hbm [resolvable:$true] %s793_s10 }
  0x41   : > { %s795_s1 = scalar_lea.hbm %s794_s10, 16 }
  0x42   : > { %p796_p10 = scmp.ne.s32.totalorder %s794_s10, %s795_s1  ;;  %p802_p7 = scmp.lt.s32.totalorder %s800_s18, %s795_s1 }
  0x44   : > { %p798_p11 = pnand %p796_p10, %p737_p5 }
  0x46   : > { %p799_p4 = pneg %p798_p11 }
  0x48   : > { %p804_p8 = pnand %p802_p7, %p799_p4 }
  0x4a   : > { %807 = shalt.err (!%p804_p8)
}
  0x4b   : > { %649 = dma.hbm_to_vmem [thread:$0]  (!%p1074_p2), %s269_s21, 256, %s271_s26, %s1083_s14, %s1235_s12, %s1235_s12, %s966_s8  }
  0x4c   : > { %282 = sbr.rel (%p1102_p1) target bundleno = 247 (0xf7), region = 32  ;;  %s284_s25 = sand.u32 (!%p1102_p1), 1, %s950_s19  }
  0x4d   : > { %s1138_s28 = sshll.u32 (!%p1102_p1), %s284_s25, 4  ;;  %s285_s24 = scalar_lea.sflag (!%p1102_p1), [#allocation5], %s284_s25 }
  0x4e   : > { %s288_s29 = scalar_lea.vmem (!%p1102_p1), [#allocation4], %s1138_s28 }
  0x51   : > { %916 = dma.done.wait (%p1047_p6), %s285_s24, 256  }
  0x52   : > { %918 = vsyncadd (%p1047_p6), %s285_s24, 4294967040  ;;  %s294_s21 = sand.u32 1, %s1033_s23   ;;  %s298_s14 = scalar_lea.vmem [#allocation7], %s1138_s28 }
  0x53   : > { %s295_s7 = scalar_lea.sflag [#allocation8], %s294_s21 }
  0x54   : > { %920 = dma.done.wait (%p1047_p6), %s295_s7, 512  }
  0x55   : > { %922 = vsyncadd (%p1047_p6), %s295_s7, 4294966784  ;;  %v372_v0 = vlaneseq  ;;  %s624_s8 = sshll.u32 %s954_s20, 4  ;;  %v365_v8 = vld [vmem:[%s288_s29] sm:$0xff]  ;;  %v366_v9 = vld [vmem:[%s288_s29 + $0x8] sm:$0xff]  ;;  %s308_s23 = scalar_lea.vmem [#allocation9], %s1138_s28 }
  0x56   : > { %v378_v1 = vstv %s624_s8  ;;  %v367_v10 = vld [vmem:[%s298_s14] sm:$0xff]  ;;  %v368_v11 = vld [vmem:[%s298_s14 + $0x8] sm:$0xff]  ;;  %s1154_s27 = sand.u32 1, %s938_s16   ;;  %s445_s26 = scalar_lea.hbm %s1219_s3, %s954_s20 }
  0x57   : > { %v373_v2 = vshrl.u32 %v372_v0, 7  ;;  %v376_v4 = vand.u32 127, %v372_v0  ;;  %vm387_vm0 = vcmp.ge.f32.partialorder %v367_v10, 0.5  ;;  %v391_v14 = vsub.f32 %v365_v8, %v367_v10  ;;  %v369_v15 = vld [vmem:[%s308_s23] sm:$0xff]  ;;  %v370_v17 = vld [vmem:[%s308_s23 + $0x8] sm:$0xff]  ;;  %s340_s10 = scalar_lea.vmem [#allocation10], %s1154_s27  ;;  %s458_s25 = scalar_lea.hbm %s1220_s4, %s954_s20 }
  0x58   : > { %v392_v16 = vsub.f32 %v366_v9, %v368_v11  ;;  %vm388_vm2 = vcmp.ge.f32.partialorder %v368_v11, 0.5  ;;  %s447_s1 = sshll.u32 %s340_s10, 4  ;;  %s449_s9 = sshll.u32 %s445_s26, 4  ;;  %s448_s1 = int_to_ptr.vmem [resolvable:$true] %s447_s1  ;;  %s450_s9 = int_to_ptr.hbm [resolvable:$true] %s449_s9 }
  0x59   : > { %v374_v3 = vadd.s32 8, %v373_v2  ;;  %v379_v5 = vadd.s32 %v378_v1, %v373_v2  ;;  %v393_v19 = vmul.f32 %v391_v14, %v391_v14  ;;  %s433_s28 = scalar_lea.sflag [#allocation6], %s1154_s27  ;;  %s837_s24 = sshra.s32 %s450_s9, 4  ;;  %s838_s24 = int_to_ptr.hbm [resolvable:$true] %s837_s24 }
  0x5a   : > { %v394_v20 = vmul.f32 %v392_v16, %v392_v16  ;;  %s839_s29 = scalar_lea.hbm %s838_s24, 1  ;;  %s843_s14 = scalar_lea.hbm %s1219_s3, 2 }
  0x5b   : > { %v380_v6 = vadd.s32 %v378_v1, %v374_v3  ;;  %v381_v7 = vmul.u32 128, %v379_v5  ;;  %v395_v21 = vmul.f32 %v393_v19, %v369_v15  ;;  %p840_p6 = scmp.ne.s32.totalorder %s838_s24, %s839_s29  ;;  %p844_p1 = scmp.lt.s32.totalorder %s838_s24, %s1219_s3 }
  0x5c   : > { %v396_v23 = vmul.f32 %v394_v20, %v370_v17  ;;  %p845_p3 = scmp.lt.s32.totalorder %s843_s14, %s839_s29 }
  0x5d   : > { %v382_v12 = vmul.u32 128, %v380_v6  ;;  %v383_v13 = vadd.s32 %v381_v7, %v376_v4  ;;  %p841_p2 = pnand %p840_p6, %p1062_p12 }
  0x5e   : > { %p846_p9 = por %p845_p3, %p844_p1 }
  0x5f   : > { %v384_v18 = vadd.s32 %v382_v12, %v376_v4  ;;  %vm385_vm1 = vcmp.lt.s32.totalorder %v383_v13, 2048  ;;  %p842_p5 = pneg %p841_p2 }
  0x60   : > { %vm389_vm3 = vmand %vm387_vm0, %vm385_vm1 }
  0x61   : > { %vm386_vm4 = vcmp.lt.s32.totalorder %v384_v18, 2048  ;;  %v399_v22 = vsel %vm389_vm3, %v369_v15, 0.0  ;;  %v397_v24 = vsel %vm389_vm3, %v395_v21, 0.0  ;;  %p847_p10 = pnand %p846_p9, %p842_p5 }
  0x62   : > { %vm390_vm5 = vmand %vm388_vm2, %vm386_vm4 }
  0x63   : > { %v400_v25 = vsel %vm390_vm5, %v370_v17, 0.0  ;;  %v398_v26 = vsel %vm390_vm5, %v396_v23, 0.0 }
  0x64   : > { %v406_v27 = vadd.f32 %v400_v25, %v399_v22  ;;  %v402_v28 = vadd.f32 %v398_v26, %v397_v24 }
  0x66   : > { %v422_v29 = vrot.slane %v406_v27, 4  ;;  %v413_v30 = vrot.slane %v402_v28, 4 }
  0x68   : > { %v423_v31 = vadd.f32 %v422_v29, %v406_v27  ;;  %v414_v32 = vadd.f32 %v413_v30, %v402_v28 }
  0x6a   : > { %v415_v33 = vrot.slane %v414_v32, 2  ;;  %v424_v34 = vrot.slane %v423_v31, 2 }
  0x6c   : > { %v416_v35 = vadd.f32 %v415_v33, %v414_v32  ;;  %v425_v37 = vadd.f32 %v424_v34, %v423_v31 }
  0x6e   : > { %v417_v36 = vrot.slane %v416_v35, 1  ;;  %v426_v39 = vrot.slane %v425_v37, 1 }
  0x70   : > { %v418_v38 = vadd.f32 %v417_v36, %v416_v35  ;;  %v427_v40 = vadd.f32 %v426_v39, %v425_v37 }
  0x72   : > { %419 = vadd.xlane.f32.xlu0 %v418_v38 }
  0x7a   : > { %428 = vadd.xlane.f32.xlu0 %v427_v40 }
  0xe5   : > { %v420_v41 = vpop.xlane.xlu0 %419 }
  0xe6   : > { %430 = vst [vmem:[%s340_s10] sm:$0x1] %v420_v41 }
  0xe7   : > { %850 = shalt.err (!%p847_p10)
}
  0xe8   : > { %636 = dma.vmem_to_hbm [thread:$0]  (%p1062_p12), %s448_s1, 16, %s450_s9, %s433_s28  }
  0xe9   : > { %s346_s20 = scalar_lea.vmem [#allocation11], %s1154_s27  ;;  %s462_s12 = sshll.u32 %s458_s25, 4  ;;  %s463_s12 = int_to_ptr.hbm [resolvable:$true] %s462_s12 }
  0xea   : > { %s460_s11 = sshll.u32 %s346_s20, 4  ;;  %s437_s26 = scalar_lea.sflag [#allocation12], %s1154_s27  ;;  %s461_s11 = int_to_ptr.vmem [resolvable:$true] %s460_s11 }
  0xeb   : > { %s865_s10 = sshra.s32 %s463_s12, 4  ;;  %s871_s29 = scalar_lea.hbm %s1220_s4, 2  ;;  %s866_s10 = int_to_ptr.hbm [resolvable:$true] %s865_s10 }
  0xec   : > { %s867_s13 = scalar_lea.hbm %s866_s10, 1  ;;  %p872_p8 = scmp.lt.s32.totalorder %s866_s10, %s1220_s4 }
  0xed   : > { %v429_v42 = vpop.xlane.xlu0 %428  ;;  %p868_p11 = scmp.ne.s32.totalorder %s866_s10, %s867_s13  ;;  %p873_p6 = scmp.lt.s32.totalorder %s871_s29, %s867_s13 }
  0xee   : > { %431 = vst [vmem:[%s346_s20] sm:$0x1] %v429_v42 }
  0xef   : > { %p869_p4 = pnand %p868_p11, %p1062_p12  ;;  %p874_p2 = por %p873_p6, %p872_p8 }
  0xf1   : > { %p870_p7 = pneg %p869_p4 }
  0xf3   : > { %p875_p5 = pnand %p874_p2, %p870_p7 }
  0xf5   : > { %878 = shalt.err (!%p875_p5)
}
  0xf6   : > { %637 = dma.vmem_to_hbm [thread:$0]  (%p1062_p12), %s461_s11, 16, %s463_s12, %s437_s26  }
  0xf7 PF: > { %s474_s27 = sand.u32 1, %s934_s15   ;;  %p651_p1 = pnand %p610_p13, %p1067_p0 }
  0xf8   : > { %s475_s25 = scalar_lea.sflag [#allocation6], %s474_s27 }
  0xf9   : > { %p652_p3 = pneg %p651_p1 }
  0xfb   : > { %924 = dma.done.wait (%p652_p3), %s475_s25, 16  }
  0xfc   : > { %926 = vsyncadd (%p652_p3), %s475_s25, 4294967280  ;;  %s484_s28 = scalar_lea.sflag [#allocation12], %s474_s27 }
  0xfd   : > { %928 = dma.done.wait (%p652_p3), %s484_s28, 16  }
  0xfe   : > { %930 = vsyncadd (%p652_p3), %s484_s28, 4294967280  ;;  %s27_s22 = sadd.s32 1, %s962_s22   ;;  %s1236_s20 = sld [smem:[#allocation17_spill]] }
  0xff   : > { %p24_p9 = scmp.ge.s32.totalorder %s27_s22, 4   ;;  %s1237_s21 = sld [smem:[#allocation18_spill]] }
 0x100   : > { %s1238_s15 = smov %s938_s16  ;;  %s1239_s16 = smov %s942_s17 }
 0x101   : > { %s1240_s17 = smov %s1055_s30  ;;  %s1241_s18 = smov %s950_s19 }
 0x102   : > { %s1206_s19 = smov 0   ;;  %26 = sbr.rel (!%p24_p9) target bundleno = 13 (0xd), region = 126 }
 0x107   :  { %489 = vsyncpa [#allocation5], 1 }
 0x108   :  { %491 = vsyncpa [#allocation5 + $0x1], 1 }
 0x109   :  { %492 = vsyncpa [#allocation8], 1 }
 0x10a   :  { %494 = vsyncpa [#allocation8 + $0x1], 1 }
 0x10b   :  { %495 = vsyncpa [#allocation6], 1 }
 0x10c   :  { %497 = vsyncpa [#allocation6 + $0x1], 1 }
 0x10d   :  { %498 = vsyncpa [#allocation12], 1 }
 0x10e   :  { %500 = vsyncpa [#allocation12 + $0x1], 1 }

</bundles_post_ra>
